<compile_context>
chip_gen: v7x
topology: tpu7x:2x2x1
jax: 0.10.0
libtpu: 0.0.40
codegen_flags: <defaults>
</compile_context>

<pallas_src>
import functools
import math

import jax
import jax.numpy as jnp
from jax.experimental import pallas as pl
from jax.experimental.pallas import tpu as pltpu

_LANE = 128        # lane width (last dim)
_ROW_ALIGN = 16    # row-tile alignment: whole (16,128) vregs even for bf16 packing


def _round_up(n, m):
    return ((n + m - 1) // m) * m


def _cdiv(a, b):
    return (a + b - 1) // b


def _make_kernel(nx, ny):
    """Kernel factory; nx/ny are static (trace-time) ints."""
    small_nx = nx <= 8

    def kernel(x_ref, w1_ref, b1_ref, w2_ref, b2_ref, o_ref):
        if small_nx:
            # First layer with a tiny contraction dim: rank-1 VPU broadcast updates
            # (avoids a degenerate-K MXU matmul; K=nx is only 2 for the circles task).
            xf = x_ref[...].astype(jnp.float32)          # (tm, nx)
            w1f = w1_ref[...].astype(jnp.float32)        # (nx, nh_p)
            h = xf[:, 0:1] * w1f[0:1, :]                 # (tm, nh_p) f32
            for k in range(1, nx):
                h = h + xf[:, k:k + 1] * w1f[k:k + 1, :]
        else:
            # General path: MXU matmul with f32 accumulation.
            h = jnp.dot(x_ref[...], w1_ref[...],
                        preferred_element_type=jnp.float32)
        # Bias add + tanh in f32 (v5e VPU/EUP have no bf16).
        h = jnp.tanh(h + b1_ref[...])
        # Second layer on the MXU: (tm, nh_p) @ (nh_p, ny_p), f32 accumulation.
        # w2 output lanes are padded to 128 (resident weight, negligible cost) so the
        # matmul is fully lane-native; slice the real ny lanes before the store so the
        # HBM writeback stays (tm, ny).
        y = jnp.dot(h.astype(w2_ref.dtype), w2_ref[...],
                    preferred_element_type=jnp.float32)
        o_ref[...] = (y[:, :ny] + b2_ref[...]).astype(o_ref.dtype)

    return kernel


def prepare_params(w1, b1, w2, b2, compute_dtype=jnp.float32):
    """Pad weights once (hoisted out of the per-forward path).

    w1: (nx, nh)  (= PyTorch linear1.weight.T)    b1: (1, nh) or (nh,)
    w2: (nh, ny)  (= PyTorch linear2.weight.T)    b2: (1, ny) or (ny,)
    compute_dtype: jnp.float32 (exact) or jnp.bfloat16 (MXU-input perf mode,
    valid on v5e/v6e/v7x; accumulation stays f32 in the kernel).
    """
    nx, nh = w1.shape
    ny = w2.shape[-1]
    nh_p = _round_up(nh, _LANE)
    ny_p = _round_up(ny, _LANE)
    f32 = jnp.float32
    w1_p = jnp.zeros((nx, nh_p), compute_dtype).at[:, :nh].set(
        w1.astype(compute_dtype))
    b1_p = jnp.zeros((1, nh_p), f32).at[:, :nh].set(
        b1.astype(f32).reshape(1, nh))
    w2_p = jnp.zeros((nh_p, ny_p), compute_dtype).at[:nh, :ny].set(
        w2.astype(compute_dtype))
    b2_p = b2.astype(f32).reshape(1, ny)
    return w1_p, b1_p, w2_p, b2_p


@functools.partial(jax.jit, static_argnames=("block_rows", "small_batch_rows"))
def circle_model_forward(x, w1_p, b1_p, w2_p, b2_p, *, block_rows=4096,
                         small_batch_rows=0):
    """Forward pass: tanh(x @ w1 + b1) @ w2 + b2 (no final activation).

    x: (B, nx) float32; padded params from prepare_params().
    Returns (B, ny) float32 logits.
    """
    B, nx = x.shape
    nh_p = w1_p.shape[1]
    ny = b2_p.shape[1]
    ny_p = w2_p.shape[1]
    cd = w1_p.dtype  # compute dtype for the MXU inputs (f32 or bf16)

    # Optional small-batch fast path: at tiny B the kernel is pure fixed overhead,
    # a fused jnp expression wins. Off by default (small_batch_rows=0).
    if B <= small_batch_rows:
        h = jnp.tanh(jnp.dot(x.astype(cd), w1_p,
                             preferred_element_type=jnp.float32) + b1_p)
        y = jnp.dot(h.astype(cd), w2_p, preferred_element_type=jnp.float32)
        return y[:, :ny] + b2_p

    # Row tiling: >= 2 tiles whenever the batch is big enough (feeds both v7x
    # TensorCores via dimension_semantics="parallel"), tiles capped at block_rows,
    # last-tile padding bounded by one 16-row group.
    B_al = _round_up(B, _ROW_ALIGN)
    n_tiles = 1 if B_al <= 2 * _ROW_ALIGN else max(2, _cdiv(B_al, block_rows))
    tm = _round_up(_cdiv(B_al, n_tiles), _ROW_ALIGN)
    n_tiles = _cdiv(B_al, tm)
    B_p = tm * n_tiles

    if B_p == B:
        x_p = x.astype(cd)
    else:
        x_p = jnp.zeros((B_p, nx), cd).at[:B].set(x.astype(cd))

    kernel = _make_kernel(nx, ny)

    in_bytes = (x_p.size * x_p.dtype.itemsize
                + w1_p.size * w1_p.dtype.itemsize
                + b1_p.size * b1_p.dtype.itemsize
                + w2_p.size * w2_p.dtype.itemsize
                + b2_p.size * b2_p.dtype.itemsize)
    out_bytes = B_p * ny * 4
    cost = pl.CostEstimate(
        flops=2 * B_p * (nx * nh_p + nh_p * ny_p),
        transcendentals=B_p * nh_p,
        bytes_accessed=in_bytes + out_bytes,
    )

    out_p = pl.pallas_call(
        kernel,
        out_shape=jax.ShapeDtypeStruct((B_p, ny), jnp.float32),
        grid=(n_tiles,),
        in_specs=[
            # x: tiled over the batch axis, last dim = nx (full array dim -> legal,
            # lane-sparse but 64x less HBM than padding to 128).
            pl.BlockSpec((tm, nx), lambda i: (i, 0)),
            # Weights / biases: constant index_maps -> resident across grid steps.
            pl.BlockSpec((nx, nh_p), lambda i: (0, 0)),
            pl.BlockSpec((1, nh_p), lambda i: (0, 0)),
            pl.BlockSpec((nh_p, ny_p), lambda i: (0, 0)),
            pl.BlockSpec((1, ny), lambda i: (0, 0)),
        ],
        # Unpadded output: HBM writeback is (tm, ny), not (tm, 128).
        out_specs=pl.BlockSpec((tm, ny), lambda i: (i, 0)),
        compiler_params=pltpu.CompilerParams(
            # Batch axis is independent -> shard across v7x's two TensorCores.
            dimension_semantics=("parallel",),
            # Explicit VMEM budget; per-tile working set is a few MiB even at
            # tm=4096, well inside v5e/v6e/v7x limits.
            vmem_limit_bytes=32 * 1024 * 1024,
        ),
        cost_estimate=cost,
    )(x_p, w1_p, b1_p, w2_p, b2_p)

    return out_p if B_p == B else out_p[:B]


def init_params(key, nx, nh, ny):
    """Deterministic init mimicking PyTorch nn.Linear (uniform(-1/sqrt(fan_in), +))."""
    k1, k2, k3, k4 = jax.random.split(key, 4)
    bound1 = 1.0 / math.sqrt(nx)
    bound2 = 1.0 / math.sqrt(nh)
    w1 = jax.random.uniform(k1, (nx, nh), jnp.float32, -bound1, bound1)
    b1 = jax.random.uniform(k2, (1, nh), jnp.float32, -bound1, bound1)
    w2 = jax.random.uniform(k3, (nh, ny), jnp.float32, -bound2, bound2)
    b2 = jax.random.uniform(k4, (1, ny), jnp.float32, -bound2, bound2)
    return w1, b1, w2, b2


if __name__ == "__main__":
    # Shapes consistent with the circles task: 2-D points, hidden=32, 2 outputs.
    B, nx, nh, ny = 8, 2, 32, 2

    key = jax.random.PRNGKey(0)
    kx, kp = jax.random.split(key)
    w1, b1, w2, b2 = init_params(kp, nx, nh, ny)

    x_small = jax.random.normal(kx, (B, nx), jnp.float32)
    ref_small = jnp.tanh(x_small @ w1 + b1) @ w2 + b2

    # Exact f32 path through the Pallas kernel (small_batch_rows defaults to 0,
    # so the kernel is exercised even at B=8).
    p_f32 = prepare_params(w1, b1, w2, b2, jnp.float32)
    out_small = jax.block_until_ready(circle_model_forward(x_small, *p_f32))
    assert out_small.shape == (B, ny)
    assert jnp.allclose(out_small, ref_small, atol=1e-5, rtol=1e-5)

    # Larger (non-multiple-of-tile) batch: exercises the multi-tile parallel grid.
    B2 = 1000
    x_big = jax.random.normal(kx, (B2, nx), jnp.float32)
    ref_big = jnp.tanh(x_big @ w1 + b1) @ w2 + b2
    out_big = jax.block_until_ready(circle_model_forward(x_big, *p_f32))
    assert out_big.shape == (B2, ny)
    assert jnp.allclose(out_big, ref_big, atol=1e-5, rtol=1e-5)

    # bf16 MXU-input perf mode (valid on v5e/v6e/v7x; f32 accumulation).
    p_bf16 = prepare_params(w1, b1, w2, b2, jnp.bfloat16)
    out_bf16 = jax.block_until_ready(circle_model_forward(x_big, *p_bf16))
    assert jnp.allclose(out_bf16, ref_big, atol=5e-2, rtol=5e-2)

    # Small-batch fast path (bypasses pallas_call when explicitly enabled).
    out_fast = jax.block_until_ready(
        circle_model_forward(x_small, *p_f32, small_batch_rows=64))
    assert jnp.allclose(out_fast, ref_small, atol=1e-5, rtol=1e-5)

    print("KERNEL_OK")
</pallas_src>

<mosaic_0001>
module attributes {stable_mosaic.version = 11 : i64} {
  func.func @kernel(%arg0: i32, %arg1: memref<16x2xf32, #tpu.memory_space<vmem>>, %arg2: memref<2x128xf32, #tpu.memory_space<vmem>>, %arg3: memref<1x128xf32, #tpu.memory_space<vmem>>, %arg4: memref<128x128xf32, #tpu.memory_space<vmem>>, %arg5: memref<1x2xf32, #tpu.memory_space<vmem>>, %arg6: memref<16x2xf32, #tpu.memory_space<vmem>>) attributes {dimension_semantics = [#tpu.dimension_semantics<parallel>], iteration_bounds = array<i64: 1>, scalar_prefetch = 0 : i64, scratch_operands = 0 : i64, tpu.core_type = #tpu.core_type<tc>, window_params = [{transform_indices = @transform_0, window_bounds = array<i64: 16, 2>}, {pipeline_mode = #tpu.pipeline_mode<synchronous>, transform_indices = @transform_1, window_bounds = array<i64: 2, 128>}, {pipeline_mode = #tpu.pipeline_mode<synchronous>, transform_indices = @transform_2, window_bounds = array<i64: 1, 128>}, {pipeline_mode = #tpu.pipeline_mode<synchronous>, transform_indices = @transform_3, window_bounds = array<i64: 128, 128>}, {pipeline_mode = #tpu.pipeline_mode<synchronous>, transform_indices = @transform_4, window_bounds = array<i64: 1, 2>}, {transform_indices = @transform_5, window_bounds = array<i64: 16, 2>}]} {
    %c0 = arith.constant 0 : index
    %c0_0 = arith.constant 0 : index
    %0 = vector.load %arg1[%c0, %c0_0] : memref<16x2xf32, #tpu.memory_space<vmem>>, vector<16x2xf32>
    %c0_1 = arith.constant 0 : index
    %c0_2 = arith.constant 0 : index
    %1 = vector.load %arg2[%c0_1, %c0_2] : memref<2x128xf32, #tpu.memory_space<vmem>>, vector<2x128xf32>
    %2 = vector.extract_strided_slice %0 {offsets = [0, 0], sizes = [16, 1], strides = [1, 1]} : vector<16x2xf32> to vector<16x1xf32>
    %3 = vector.extract_strided_slice %1 {offsets = [0, 0], sizes = [1, 128], strides = [1, 1]} : vector<2x128xf32> to vector<1x128xf32>
    %4 = vector.broadcast %2 : vector<16x1xf32> to vector<16x128xf32>
    %5 = vector.broadcast %3 : vector<1x128xf32> to vector<16x128xf32>
    %6 = arith.mulf %4, %5 : vector<16x128xf32>
    %7 = vector.extract_strided_slice %0 {offsets = [0, 1], sizes = [16, 1], strides = [1, 1]} : vector<16x2xf32> to vector<16x1xf32>
    %8 = vector.extract_strided_slice %1 {offsets = [1, 0], sizes = [1, 128], strides = [1, 1]} : vector<2x128xf32> to vector<1x128xf32>
    %9 = vector.broadcast %7 : vector<16x1xf32> to vector<16x128xf32>
    %10 = vector.broadcast %8 : vector<1x128xf32> to vector<16x128xf32>
    %11 = arith.mulf %9, %10 : vector<16x128xf32>
    %12 = arith.addf %6, %11 : vector<16x128xf32>
    %c0_3 = arith.constant 0 : index
    %c0_4 = arith.constant 0 : index
    %13 = vector.load %arg3[%c0_3, %c0_4] : memref<1x128xf32, #tpu.memory_space<vmem>>, vector<1x128xf32>
    %14 = vector.broadcast %13 : vector<1x128xf32> to vector<16x128xf32>
    %15 = arith.addf %12, %14 : vector<16x128xf32>
    %16 = math.tanh %15 : vector<16x128xf32>
    %c0_5 = arith.constant 0 : index
    %c0_6 = arith.constant 0 : index
    %17 = vector.load %arg4[%c0_5, %c0_6] : memref<128x128xf32, #tpu.memory_space<vmem>>, vector<128x128xf32>
    %cst = arith.constant dense<0.000000e+00> : vector<16x128xf32>
    %18 = tpu.matmul %16, %17, %cst {dimension_numbers = #tpu.dot_dimension_numbers<[1], [0], [0], [1], [0, 0, 1, 1], [], []>} : vector<16x128xf32>, vector<128x128xf32>, vector<16x128xf32> -> vector<16x128xf32>
    %19 = vector.extract_strided_slice %18 {offsets = [0, 0], sizes = [16, 2], strides = [1, 1]} : vector<16x128xf32> to vector<16x2xf32>
    %c0_7 = arith.constant 0 : index
    %c0_8 = arith.constant 0 : index
    %20 = vector.load %arg5[%c0_7, %c0_8] : memref<1x2xf32, #tpu.memory_space<vmem>>, vector<1x2xf32>
    %21 = vector.broadcast %20 : vector<1x2xf32> to vector<16x2xf32>
    %22 = arith.addf %19, %21 : vector<16x2xf32>
    %c0_9 = arith.constant 0 : index
    %c0_10 = arith.constant 0 : index
    %23 = vector.load %arg6[%c0_9, %c0_10] : memref<16x2xf32, #tpu.memory_space<vmem>>, vector<16x2xf32>
    tpu.vector_store %arg6[%c0_9, %c0_10], %22 {strides = array<i32>} : memref<16x2xf32, #tpu.memory_space<vmem>>, vector<16x2xf32>,
    return
  }
  func.func @transform_0(%arg0: i32) -> (i32, i32) {
    %c0_i32 = arith.constant 0 : i32
    %c0_i32_0 = arith.constant 0 : i32
    return %arg0, %c0_i32 : i32, i32
  }
  func.func @transform_1(%arg0: i32) -> (i32, i32) {
    %c0_i32 = arith.constant 0 : i32
    %c0_i32_0 = arith.constant 0 : i32
    %c0_i32_1 = arith.constant 0 : i32
    return %c0_i32, %c0_i32_0 : i32, i32
  }
  func.func @transform_2(%arg0: i32) -> (i32, i32) {
    %c0_i32 = arith.constant 0 : i32
    %c0_i32_0 = arith.constant 0 : i32
    %c0_i32_1 = arith.constant 0 : i32
    return %c0_i32, %c0_i32_0 : i32, i32
  }
  func.func @transform_3(%arg0: i32) -> (i32, i32) {
    %c0_i32 = arith.constant 0 : i32
    %c0_i32_0 = arith.constant 0 : i32
    %c0_i32_1 = arith.constant 0 : i32
    return %c0_i32, %c0_i32_0 : i32, i32
  }
  func.func @transform_4(%arg0: i32) -> (i32, i32) {
    %c0_i32 = arith.constant 0 : i32
    %c0_i32_0 = arith.constant 0 : i32
    %c0_i32_1 = arith.constant 0 : i32
    return %c0_i32, %c0_i32_0 : i32, i32
  }
  func.func @transform_5(%arg0: i32) -> (i32, i32) {
    %c0_i32 = arith.constant 0 : i32
    %c0_i32_0 = arith.constant 0 : i32
    return %arg0, %c0_i32 : i32, i32
  }
}

</mosaic_0001>

<bundles_post_ra>
// kernel: circle_model_forward.1
= control target key start
LH: loop header
LB: loop body
LE: loop exit
PB: predicated region body
PF: predicated region fallthrough
CT: control target
= control target key end

     0   :  { %10 = vsyncpa [#allocation3], 0  ;;  %s312_s18 = smov [#allocation2]   ;;  %s380_s0 = inlined_call_operand.vmem [shape: f32[16,2], index: 0, kind: input, shape index: {}]   ;;  %s381_s1 = inlined_call_operand.vmem [shape: f32[2,128], index: 1, kind: input, shape index: {}]   ;;  %s382_s2 = inlined_call_operand.vmem [shape: f32[1,128], index: 2, kind: input, shape index: {}]   ;;  %s383_s3 = inlined_call_operand.hbm [shape: f32[128,128], index: 3, kind: input, shape index: {}]   ;;  %s384_s4 = inlined_call_operand.vmem [shape: f32[1,2], index: 4, kind: input, shape index: {}]   ;;  %s385_s5 = inlined_call_operand.vmem [shape: f32[16,2], index: 5, kind: output, shape index: {}]  }
   0x1   :  { %s22_s19 = sshll.u32 %s312_s18, 4  ;;  %s288_s22 = scalar_lea.hbm %s383_s3, 2048  ;;  %s23_s19 = int_to_ptr.vmem [resolvable:$true] %s22_s19 }
   0x2   :  { %p289_p0 = scmp.ne.s32.totalorder %s383_s3, %s288_s22  ;;  %p292_p1 = scmp.lt.u32.totalorder %s288_s22, %s383_s3 }
   0x4   :  { %p294_p2 = pnand %p292_p1, %p289_p0 }
   0x6   :  { %297 = shalt.err (!%p294_p2)
}
   0x7   :  { %s298_s27 = scalar_lea.vmem %s23_s19, 2048  ;;  %p303_p4 = scmp.lt.s32.totalorder %s23_s19, %s23_s19 }
   0x8   :  { %p299_p3 = scmp.ne.s32.totalorder %s23_s19, %s298_s27  ;;  %p304_p5 = scmp.lt.s32.totalorder %s298_s27, %s298_s27 }
   0xa   :  { %p305_p6 = por %p304_p5, %p303_p4 }
   0xc   :  { %p306_p7 = pnand %p305_p6, %p299_p3 }
   0xe   :  { %309 = shalt.err (!%p306_p7)
}
   0xf   :  { %s313_s28 = smov 128   ;;  %s314_s29 = smov 8  }
  0x10   :  { %28 = dma.hbm_to_vmem [thread:$0]  %s383_s3, 2048, %s23_s19, [#allocation3], %s313_s28, %s313_s28, %s314_s29  }
  0x11   :  { %310 = dma.done.wait [#allocation3], 2048  }
  0x12   :  { %311 = vsyncadd [#allocation3], 4294965248  ;;  %v315_v0 = vmov 0   ;;  %v35_v1 = vld [vmem:[%s380_s0 + $0x8] sm:$0xff]  ;;  %v34_v2 = vld [vmem:[%s380_s0] sm:$0xff]  ;;  %v316_v9 = vmov 1   ;;  %v47_v28 = vlaneseq }
  0x13   :  { %282 = vset.pattern.permute.xlu1 %v315_v0  ;;  %280 = vset.pattern.permute.xlu0 %v315_v0  ;;  %v80_v3 = vld [vmem:[#allocation2] sm:$0xff]  ;;  %v81_v4 = vld [vmem:[#allocation2 + $0x8] sm:$0xff]  ;;  %v82_v5 = vld [vmem:[#allocation2 + $0x10] sm:$0xff]  ;;  %vm180_vm0 = vcmask 15360  }
  0x14   :  { %44 = vperm.xlu1 %282, %v35_v1   ;;  %39 = vperm.xlu0 %280, %v34_v2   ;;  %v83_v6 = vld [vmem:[#allocation2 + $0x18] sm:$0xff]  ;;  %v243_v7 = vpack.c.bf16 %v81_v4, %v80_v3  ;;  %v84_v10 = vld [vmem:[#allocation2 + $0x20] sm:$0xff]  ;;  %v85_v11 = vld [vmem:[#allocation2 + $0x28] sm:$0xff]  ;;  %v48_v29 = vshrl.u32 %v47_v28, 7 }
  0x15   :  { %v247_v8 = vpack.c.bf16 %v83_v6, %v82_v5  ;;  %v251_v12 = vpack.c.bf16 %v85_v11, %v84_v10  ;;  %v86_v13 = vld [vmem:[#allocation2 + $0x30] sm:$0xff]  ;;  %v87_v14 = vld [vmem:[#allocation2 + $0x38] sm:$0xff]  ;;  %v88_v16 = vld [vmem:[#allocation2 + $0x40] sm:$0xff] }
  0x16   :  { %244 = vmatprep.subr.bf16.mxu0 %v243_v7  ;;  %v255_v15 = vpack.c.bf16 %v87_v14, %v86_v13  ;;  %v89_v17 = vld [vmem:[#allocation2 + $0x48] sm:$0xff]  ;;  %v90_v19 = vld [vmem:[#allocation2 + $0x50] sm:$0xff]  ;;  %v91_v20 = vld [vmem:[#allocation2 + $0x58] sm:$0xff]  ;;  %v49_v30 = vsub.s32 0, %v48_v29  ;;  %v63_v31 = vsub.s32 1, %v48_v29 }
  0x17   :  { %246 = vmatpush3.bf16.msra.mxu0 %v243_v7  ;;  %v259_v18 = vpack.c.bf16 %v89_v17, %v88_v16  ;;  %v263_v21 = vpack.c.bf16 %v91_v20, %v90_v19  ;;  %v92_v22 = vld [vmem:[#allocation2 + $0x60] sm:$0xff]  ;;  %v93_v23 = vld [vmem:[#allocation2 + $0x68] sm:$0xff]  ;;  %v94_v25 = vld [vmem:[#allocation2 + $0x70] sm:$0xff] }
  0x18   :  { %283 = vset.pattern.permute.xlu1 %v316_v9  ;;  %281 = vset.pattern.permute.xlu0 %v316_v9  ;;  %v267_v24 = vpack.c.bf16 %v93_v23, %v92_v22  ;;  %v95_v26 = vld [vmem:[#allocation2 + $0x78] sm:$0xff]  ;;  %v36_v32 = vld [vmem:[%s381_s1] sm:$0x3] }
  0x19   :  { %58 = vperm.xlu1 %283, %v35_v1   ;;  %54 = vperm.xlu0 %281, %v34_v2   ;;  %v271_v27 = vpack.c.bf16 %v95_v26, %v94_v25  ;;  %v50_v35 = vrot.slane %v36_v32, %v49_v30  ;;  %v64_v36 = vrot.slane %v36_v32, %v63_v31  ;;  %v188_v43 = vld [vmem:[%s382_s2] ss:$0 sm:$0xff] }
  0x1a   :  { %248 = vmatprep.subr.bf16.mxu0 %v247_v8  ;;  %v189_v50 = vld [vmem:[%s384_s4] ss:$0 sm:$0xff] }
  0x1b   :  { %250 = vmatpush3.bf16.msra.mxu0 %v247_v8 }
  0x1c   :  { %252 = vmatprep.subr.bf16.mxu0 %v251_v12 }
  0x1f   :  { %254 = vmatpush3.bf16.msra.mxu0 %v251_v12 }
  0x20   :  { %256 = vmatprep.subr.bf16.mxu0 %v255_v15 }
  0x23   :  { %258 = vmatpush3.bf16.msra.mxu0 %v255_v15 }
  0x24   :  { %260 = vmatprep.subr.bf16.mxu0 %v259_v18 }
  0x27   :  { %262 = vmatpush3.bf16.msra.mxu0 %v259_v18 }
  0x28   :  { %264 = vmatprep.subr.bf16.mxu0 %v263_v21 }
  0x2b   :  { %266 = vmatpush3.bf16.msra.mxu0 %v263_v21 }
  0x2c   :  { %268 = vmatprep.subr.bf16.mxu0 %v267_v24 }
  0x2f   :  { %270 = vmatpush3.bf16.msra.mxu0 %v267_v24 }
  0x30   :  { %272 = vmatprep.subr.bf16.mxu0 %v271_v27 }
  0x33   :  { %274 = vmatpush3.bf16.msra.mxu0 %v271_v27 }
  0x93   :  { %v40_v33 = vpop.permute.xlu0 %39  ;;  %v45_v34 = vpop.permute.xlu1 %44 }
  0x94   :  { %v51_v39 = vmul.f32 %v50_v35, %v40_v33  ;;  %v52_v40 = vmul.f32 %v50_v35, %v45_v34 }
  0x98   :  { %v59_v37 = vpop.permute.xlu1 %58  ;;  %v55_v38 = vpop.permute.xlu0 %54 }
  0x99   :  { %v66_v41 = vmul.f32 %v64_v36, %v59_v37  ;;  %v65_v42 = vmul.f32 %v64_v36, %v55_v38 }
  0x9b   :  { %v68_v44 = vadd.f32 %v66_v41, %v52_v40  ;;  %v67_v45 = vadd.f32 %v65_v42, %v51_v39 }
  0x9d   :  { %v76_v46 = vadd.f32 %v188_v43, %v67_v45  ;;  %v77_v47 = vadd.f32 %v188_v43, %v68_v44 }
  0x9f   :  { %284 = vtanh.f32 %v76_v46 }
  0xa0   :  { %286 = vtanh.f32 %v77_v47 }
  0xa9   :  { %v285_v48 = vpop.eup %284 }
  0xaa   :  { %v287_v49 = vpop.eup %286  ;;  %240 = vmatprep.mubr.f32.mxu0 %v285_v48 }
  0xab   :  { %241 = vmatmul.mubr.f32.vlgmr.msra.gmra.mrb[0].mxu0 %v287_v49 }
 0x17e   :  { %v242_v51 = vpop.f32.mrb[0].mxu0 }
 0x17f   :  { %v179_v52 = vadd.f32 %v242_v51, %v189_v50  ;;  %v162_v53 = vpop.f32.mrb[1].mxu0 }
 0x180   :  { %v178_v54 = vadd.f32 %v189_v50, %v162_v53 }
 0x181   :  { %182 = vst.msk [vmem:[%s385_s5 + $0x8] sm:$0xff] %vm180_vm0, %v179_v52 }
 0x182   :  { %181 = vst.msk [vmem:[%s385_s5] sm:$0xff] %vm180_vm0, %v178_v54 }
 0x183   :  { %187 = vsyncpa [#allocation3], 1 }

</bundles_post_ra>
